<compile_context>
chip_gen: v5e
topology: v5e:2x2
jax: 0.10.0
libtpu: 0.0.40
codegen_flags: <defaults>
</compile_context>

<pallas_src>
import math

import jax
import jax.numpy as jnp
from jax.experimental import pallas as pl
from jax.experimental.pallas import tpu as pltpu

# (c_in, c_out, dilation, apply_relu) for conv1, conv2, conv3, conv4, conv6, conv5
# in the order they are applied in DilatedNet.forward.
LAYERS = (
    (4, 2, 1, True),   # conv1
    (2, 2, 1, True),   # conv2
    (2, 2, 2, True),   # conv3
    (2, 3, 4, True),   # conv4
    (3, 3, 8, True),   # conv6
    (3, 1, 4, False),  # conv5 (no relu)
)
DILATIONS = [1, 1, 2, 4, 8, 4]
RECEPTIVE_FIELD = sum(DILATIONS) + 1  # 21
NUM_INPUTS = 4
N_STEPS_PAST = 16

# Static offsets of each layer's weights / biases inside the flat SMEM param slab.
_W_OFF = []
_B_OFF = []
_off = 0
for _c_in, _c_out, _, _ in LAYERS:
    _W_OFF.append(_off)
    _off += _c_out * _c_in * 2
for _c_in, _c_out, _, _ in LAYERS:
    _B_OFF.append(_off)
    _off += _c_out
PARAM_SIZE = _off  # 83 floats -> one sub-kilobyte SMEM slab


def _conv1d_k2(xs, p_ref, w_off, b_off, c_in, c_out, d, relu):
    """One kernel_size=2 dilated 'valid' conv, channels fully unrolled on the VPU.

    xs    : list of c_in arrays, each (B, W_in) float32 (time on lanes)
    p_ref : SMEM ref, flat params; weights for this layer start at w_off (o, i, k
            row-major), biases at b_off.
    returns: list of c_out arrays, each (B, W_in - d) float32
    """
    w_in = xs[0].shape[1]
    w_out = w_in - d
    ys = []
    for o in range(c_out):
        acc = None
        for c in range(c_in):
            x = xs[c]
            w0 = p_ref[w_off + (o * c_in + c) * 2 + 0]
            w1 = p_ref[w_off + (o * c_in + c) * 2 + 1]
            # y[b, o, t] = sum_c w[o,c,0]*x[b,c,t] + w[o,c,1]*x[b,c,t+d] + b[o]
            term = w0 * x[:, :w_out] + w1 * x[:, d:d + w_out]
            acc = term if acc is None else acc + term
        acc = acc + p_ref[b_off + o]  # bias folded once; no zeros-splat init
        if relu:
            acc = jnp.maximum(acc, 0.0)
        ys.append(acc)
    return ys


def dilatednet_kernel(x_ref, p_ref, out_ref, xpad_ref):
    # x_ref   : (C=4, B, T_eff) VMEM, channel-major, T_eff <= RECEPTIVE_FIELD
    # p_ref   : (PARAM_SIZE,)   SMEM, all weights then all biases
    # out_ref : (1, B)          VMEM, lane-dense (batch on lanes)
    # xpad_ref: (C, B, RECEPTIVE_FIELD) VMEM scratch with left zero padding
    c_dim, b_dim, t_in = x_ref.shape
    pad = RECEPTIVE_FIELD - t_in  # static at trace time

    # In-kernel left zero-padding (replaces jnp.pad in the wrapper).
    if pad > 0:
        xpad_ref[...] = jnp.zeros_like(xpad_ref)
    for c in range(c_dim):
        xpad_ref[c, :, pad:] = x_ref[c]

    xs = [xpad_ref[c] for c in range(c_dim)]  # each (B, 21), time on lanes

    for i, (c_in, c_out, d, relu) in enumerate(LAYERS):
        xs = _conv1d_k2(xs, p_ref, _W_OFF[i], _B_OFF[i], c_in, c_out, d, relu)

    # Final layer: 1 output channel, width 1 -> xs[0] is (B, 1), batch on sublanes.
    # Emit lane-dense (1, B): mask with an identity and reduce over sublanes.
    col = xs[0]                                                        # (B, 1)
    row_id = jax.lax.broadcasted_iota(jnp.int32, (b_dim, b_dim), 0)
    col_id = jax.lax.broadcasted_iota(jnp.int32, (b_dim, b_dim), 1)
    diag = jnp.where(row_id == col_id, col, 0.0)                       # (B, B)
    out_ref[...] = jnp.sum(diag, axis=0, keepdims=True)                # (1, B)


def dilatednet_forward(x, params):
    """x: (B, num_inputs, T) float; params: list of (w, b) per layer (PyTorch layout)."""
    b_dim, c_dim, t = x.shape
    assert c_dim == NUM_INPUTS

    # Only the last time step is returned; it depends on at most the last
    # RECEPTIVE_FIELD samples, so crop before touching the kernel.
    if t > RECEPTIVE_FIELD:
        x = x[:, :, t - RECEPTIVE_FIELD:]

    # Channel-major (C, B, T): channel slices become first-axis indexing in-kernel.
    x_cm = jnp.transpose(x.astype(jnp.float32), (1, 0, 2))

    # One flat f32 param slab: all (o, i, k)-flattened weights, then all biases.
    flat = [w.reshape(-1).astype(jnp.float32) for w, _ in params]
    flat += [b.astype(jnp.float32) for _, b in params]
    p_vec = jnp.concatenate(flat)
    assert p_vec.shape[0] == PARAM_SIZE

    out = pl.pallas_call(
        dilatednet_kernel,
        out_shape=jax.ShapeDtypeStruct((1, b_dim), jnp.float32),
        in_specs=[
            pl.BlockSpec(memory_space=pltpu.MemorySpace.VMEM),
            pl.BlockSpec(memory_space=pltpu.MemorySpace.SMEM),
        ],
        out_specs=pl.BlockSpec(memory_space=pltpu.MemorySpace.VMEM),
        scratch_shapes=[
            pltpu.VMEM((NUM_INPUTS, b_dim, RECEPTIVE_FIELD), jnp.float32),
        ],
    )(x_cm, p_vec)
    return out.reshape(b_dim, 1)  # module returns (batch, 1)


def init_params(key):
    """Deterministic Conv1d-like init (uniform +- 1/sqrt(fan_in), fan_in = c_in*k)."""
    params = []
    for (c_in, c_out, _, _) in LAYERS:
        key, kw, kb = jax.random.split(key, 3)
        bound = 1.0 / math.sqrt(c_in * 2)
        w = jax.random.uniform(kw, (c_out, c_in, 2), jnp.float32, -bound, bound)
        b = jax.random.uniform(kb, (c_out,), jnp.float32, -bound, bound)
        params.append((w, b))
    return params


def reference_forward(x, params):
    """Pure-JAX reference using lax.conv_general_dilated (independent of kernel code)."""
    t = x.shape[2]
    pad = max(RECEPTIVE_FIELD - t, 0)
    h = jnp.pad(x.astype(jnp.float32), ((0, 0), (0, 0), (pad, 0)))
    for (w, b), (_, _, d, relu) in zip(params, LAYERS):
        h = jax.lax.conv_general_dilated(
            h, w, window_strides=(1,), padding="VALID",
            rhs_dilation=(d,), dimension_numbers=("NCH", "OIH", "NCH"),
        ) + b[None, :, None]
        if relu:
            h = jnp.maximum(h, 0.0)
    return h[:, :, -1]  # (B, 1)


if __name__ == "__main__":
    key = jax.random.PRNGKey(0)
    key, kx = jax.random.split(key)

    batch = 2
    x = jax.random.normal(kx, (batch, NUM_INPUTS, N_STEPS_PAST), jnp.float32)
    params = init_params(key)

    out = jax.block_until_ready(dilatednet_forward(x, params))
    ref = jax.block_until_ready(reference_forward(x, params))

    assert out.shape == (batch, 1), out.shape
    assert jnp.allclose(out, ref, rtol=1e-5, atol=1e-5), (out, ref)
    print("KERNEL_OK")
</pallas_src>

<mosaic_0001>
module attributes {stable_mosaic.version = 11 : i64} {
  func.func @dilatednet_kernel(%arg0: memref<4x2x16xf32, #tpu.memory_space<vmem>>, %arg1: memref<81xf32, #tpu.memory_space<smem>>, %arg2: memref<1x2xf32, #tpu.memory_space<vmem>>, %arg3: memref<4x2x21xf32, #tpu.memory_space<vmem>>) attributes {dimension_semantics = [], scalar_prefetch = 0 : i64, scratch_operands = 1 : i64, tpu.core_type = #tpu.core_type<tc>} {
    %cst = arith.constant 0.000000e+00 : f32
    %0 = vector.broadcast %cst : f32 to vector<4x2x21xf32>
    %c0 = arith.constant 0 : index
    %c0_0 = arith.constant 0 : index
    %c0_1 = arith.constant 0 : index
    %1 = vector.load %arg3[%c0, %c0_0, %c0_1] : memref<4x2x21xf32, #tpu.memory_space<vmem>>, vector<4x2x21xf32>
    tpu.vector_store %arg3[%c0, %c0_0, %c0_1], %0 {strides = array<i32>} : memref<4x2x21xf32, #tpu.memory_space<vmem>>, vector<4x2x21xf32>,
    %c0_2 = arith.constant 0 : index
    %c0_3 = arith.constant 0 : index
    %c0_4 = arith.constant 0 : index
    %2 = vector.load %arg0[%c0_2, %c0_3, %c0_4] : memref<4x2x16xf32, #tpu.memory_space<vmem>>, vector<1x2x16xf32>
    %3 = vector.shape_cast %2 : vector<1x2x16xf32> to vector<2x16xf32>
    %c0_5 = arith.constant 0 : index
    %c0_6 = arith.constant 0 : index
    %c5 = arith.constant 5 : index
    %4 = vector.load %arg3[%c0_5, %c0_6, %c5] : memref<4x2x21xf32, #tpu.memory_space<vmem>>, vector<1x2x16xf32>
    %5 = vector.shape_cast %4 : vector<1x2x16xf32> to vector<2x16xf32>
    %6 = vector.shape_cast %3 : vector<2x16xf32> to vector<1x2x16xf32>
    tpu.vector_store %arg3[%c0_5, %c0_6, %c5], %6 {strides = array<i32>} : memref<4x2x21xf32, #tpu.memory_space<vmem>>, vector<1x2x16xf32>,
    %c1 = arith.constant 1 : index
    %c0_7 = arith.constant 0 : index
    %c0_8 = arith.constant 0 : index
    %7 = vector.load %arg0[%c1, %c0_7, %c0_8] : memref<4x2x16xf32, #tpu.memory_space<vmem>>, vector<1x2x16xf32>
    %8 = vector.shape_cast %7 : vector<1x2x16xf32> to vector<2x16xf32>
    %c1_9 = arith.constant 1 : index
    %c0_10 = arith.constant 0 : index
    %c5_11 = arith.constant 5 : index
    %9 = vector.load %arg3[%c1_9, %c0_10, %c5_11] : memref<4x2x21xf32, #tpu.memory_space<vmem>>, vector<1x2x16xf32>
    %10 = vector.shape_cast %9 : vector<1x2x16xf32> to vector<2x16xf32>
    %11 = vector.shape_cast %8 : vector<2x16xf32> to vector<1x2x16xf32>
    tpu.vector_store %arg3[%c1_9, %c0_10, %c5_11], %11 {strides = array<i32>} : memref<4x2x21xf32, #tpu.memory_space<vmem>>, vector<1x2x16xf32>,
    %c2 = arith.constant 2 : index
    %c0_12 = arith.constant 0 : index
    %c0_13 = arith.constant 0 : index
    %12 = vector.load %arg0[%c2, %c0_12, %c0_13] : memref<4x2x16xf32, #tpu.memory_space<vmem>>, vector<1x2x16xf32>
    %13 = vector.shape_cast %12 : vector<1x2x16xf32> to vector<2x16xf32>
    %c2_14 = arith.constant 2 : index
    %c0_15 = arith.constant 0 : index
    %c5_16 = arith.constant 5 : index
    %14 = vector.load %arg3[%c2_14, %c0_15, %c5_16] : memref<4x2x21xf32, #tpu.memory_space<vmem>>, vector<1x2x16xf32>
    %15 = vector.shape_cast %14 : vector<1x2x16xf32> to vector<2x16xf32>
    %16 = vector.shape_cast %13 : vector<2x16xf32> to vector<1x2x16xf32>
    tpu.vector_store %arg3[%c2_14, %c0_15, %c5_16], %16 {strides = array<i32>} : memref<4x2x21xf32, #tpu.memory_space<vmem>>, vector<1x2x16xf32>,
    %c3 = arith.constant 3 : index
    %c0_17 = arith.constant 0 : index
    %c0_18 = arith.constant 0 : index
    %17 = vector.load %arg0[%c3, %c0_17, %c0_18] : memref<4x2x16xf32, #tpu.memory_space<vmem>>, vector<1x2x16xf32>
    %18 = vector.shape_cast %17 : vector<1x2x16xf32> to vector<2x16xf32>
    %c3_19 = arith.constant 3 : index
    %c0_20 = arith.constant 0 : index
    %c5_21 = arith.constant 5 : index
    %19 = vector.load %arg3[%c3_19, %c0_20, %c5_21] : memref<4x2x21xf32, #tpu.memory_space<vmem>>, vector<1x2x16xf32>
    %20 = vector.shape_cast %19 : vector<1x2x16xf32> to vector<2x16xf32>
    %21 = vector.shape_cast %18 : vector<2x16xf32> to vector<1x2x16xf32>
    tpu.vector_store %arg3[%c3_19, %c0_20, %c5_21], %21 {strides = array<i32>} : memref<4x2x21xf32, #tpu.memory_space<vmem>>, vector<1x2x16xf32>,
    %c0_22 = arith.constant 0 : index
    %c0_23 = arith.constant 0 : index
    %c0_24 = arith.constant 0 : index
    %22 = vector.load %arg3[%c0_22, %c0_23, %c0_24] : memref<4x2x21xf32, #tpu.memory_space<vmem>>, vector<1x2x21xf32>
    %23 = vector.shape_cast %22 : vector<1x2x21xf32> to vector<2x21xf32>
    %c1_25 = arith.constant 1 : index
    %c0_26 = arith.constant 0 : index
    %c0_27 = arith.constant 0 : index
    %24 = vector.load %arg3[%c1_25, %c0_26, %c0_27] : memref<4x2x21xf32, #tpu.memory_space<vmem>>, vector<1x2x21xf32>
    %25 = vector.shape_cast %24 : vector<1x2x21xf32> to vector<2x21xf32>
    %c2_28 = arith.constant 2 : index
    %c0_29 = arith.constant 0 : index
    %c0_30 = arith.constant 0 : index
    %26 = vector.load %arg3[%c2_28, %c0_29, %c0_30] : memref<4x2x21xf32, #tpu.memory_space<vmem>>, vector<1x2x21xf32>
    %27 = vector.shape_cast %26 : vector<1x2x21xf32> to vector<2x21xf32>
    %c3_31 = arith.constant 3 : index
    %c0_32 = arith.constant 0 : index
    %c0_33 = arith.constant 0 : index
    %28 = vector.load %arg3[%c3_31, %c0_32, %c0_33] : memref<4x2x21xf32, #tpu.memory_space<vmem>>, vector<1x2x21xf32>
    %29 = vector.shape_cast %28 : vector<1x2x21xf32> to vector<2x21xf32>
    %c0_34 = arith.constant 0 : index
    %30 = memref.load %arg1[%c0_34] : memref<81xf32, #tpu.memory_space<smem>>
    %c1_35 = arith.constant 1 : index
    %31 = memref.load %arg1[%c1_35] : memref<81xf32, #tpu.memory_space<smem>>
    %32 = vector.extract_strided_slice %23 {offsets = [0, 0], sizes = [2, 20], strides = [1, 1]} : vector<2x21xf32> to vector<2x20xf32>
    %33 = vector.broadcast %30 : f32 to vector<2x20xf32>
    %34 = arith.mulf %33, %32 : vector<2x20xf32>
    %35 = vector.extract_strided_slice %23 {offsets = [0, 1], sizes = [2, 20], strides = [1, 1]} : vector<2x21xf32> to vector<2x20xf32>
    %36 = vector.broadcast %31 : f32 to vector<2x20xf32>
    %37 = arith.mulf %36, %35 : vector<2x20xf32>
    %38 = arith.addf %34, %37 : vector<2x20xf32>
    %c2_36 = arith.constant 2 : index
    %39 = memref.load %arg1[%c2_36] : memref<81xf32, #tpu.memory_space<smem>>
    %c3_37 = arith.constant 3 : index
    %40 = memref.load %arg1[%c3_37] : memref<81xf32, #tpu.memory_space<smem>>
    %41 = vector.extract_strided_slice %25 {offsets = [0, 0], sizes = [2, 20], strides = [1, 1]} : vector<2x21xf32> to vector<2x20xf32>
    %42 = vector.broadcast %39 : f32 to vector<2x20xf32>
    %43 = arith.mulf %42, %41 : vector<2x20xf32>
    %44 = vector.extract_strided_slice %25 {offsets = [0, 1], sizes = [2, 20], strides = [1, 1]} : vector<2x21xf32> to vector<2x20xf32>
    %45 = vector.broadcast %40 : f32 to vector<2x20xf32>
    %46 = arith.mulf %45, %44 : vector<2x20xf32>
    %47 = arith.addf %43, %46 : vector<2x20xf32>
    %48 = arith.addf %38, %47 : vector<2x20xf32>
    %c4 = arith.constant 4 : index
    %49 = memref.load %arg1[%c4] : memref<81xf32, #tpu.memory_space<smem>>
    %c5_38 = arith.constant 5 : index
    %50 = memref.load %arg1[%c5_38] : memref<81xf32, #tpu.memory_space<smem>>
    %51 = vector.extract_strided_slice %27 {offsets = [0, 0], sizes = [2, 20], strides = [1, 1]} : vector<2x21xf32> to vector<2x20xf32>
    %52 = vector.broadcast %49 : f32 to vector<2x20xf32>
    %53 = arith.mulf %52, %51 : vector<2x20xf32>
    %54 = vector.extract_strided_slice %27 {offsets = [0, 1], sizes = [2, 20], strides = [1, 1]} : vector<2x21xf32> to vector<2x20xf32>
    %55 = vector.broadcast %50 : f32 to vector<2x20xf32>
    %56 = arith.mulf %55, %54 : vector<2x20xf32>
    %57 = arith.addf %53, %56 : vector<2x20xf32>
    %58 = arith.addf %48, %57 : vector<2x20xf32>
    %c6 = arith.constant 6 : index
    %59 = memref.load %arg1[%c6] : memref<81xf32, #tpu.memory_space<smem>>
    %c7 = arith.constant 7 : index
    %60 = memref.load %arg1[%c7] : memref<81xf32, #tpu.memory_space<smem>>
    %61 = vector.extract_strided_slice %29 {offsets = [0, 0], sizes = [2, 20], strides = [1, 1]} : vector<2x21xf32> to vector<2x20xf32>
    %62 = vector.broadcast %59 : f32 to vector<2x20xf32>
    %63 = arith.mulf %62, %61 : vector<2x20xf32>
    %64 = vector.extract_strided_slice %29 {offsets = [0, 1], sizes = [2, 20], strides = [1, 1]} : vector<2x21xf32> to vector<2x20xf32>
    %65 = vector.broadcast %60 : f32 to vector<2x20xf32>
    %66 = arith.mulf %65, %64 : vector<2x20xf32>
    %67 = arith.addf %63, %66 : vector<2x20xf32>
    %68 = arith.addf %58, %67 : vector<2x20xf32>
    %c68 = arith.constant 68 : index
    %69 = memref.load %arg1[%c68] : memref<81xf32, #tpu.memory_space<smem>>
    %70 = vector.broadcast %69 : f32 to vector<2x20xf32>
    %71 = arith.addf %68, %70 : vector<2x20xf32>
    %cst_39 = arith.constant 0.000000e+00 : f32
    %72 = vector.broadcast %cst_39 : f32 to vector<2x20xf32>
    %73 = arith.maximumf %71, %72 : vector<2x20xf32>
    %c8 = arith.constant 8 : index
    %74 = memref.load %arg1[%c8] : memref<81xf32, #tpu.memory_space<smem>>
    %c9 = arith.constant 9 : index
    %75 = memref.load %arg1[%c9] : memref<81xf32, #tpu.memory_space<smem>>
    %76 = vector.extract_strided_slice %23 {offsets = [0, 0], sizes = [2, 20], strides = [1, 1]} : vector<2x21xf32> to vector<2x20xf32>
    %77 = vector.broadcast %74 : f32 to vector<2x20xf32>
    %78 = arith.mulf %77, %76 : vector<2x20xf32>
    %79 = vector.extract_strided_slice %23 {offsets = [0, 1], sizes = [2, 20], strides = [1, 1]} : vector<2x21xf32> to vector<2x20xf32>
    %80 = vector.broadcast %75 : f32 to vector<2x20xf32>
    %81 = arith.mulf %80, %79 : vector<2x20xf32>
    %82 = arith.addf %78, %81 : vector<2x20xf32>
    %c10 = arith.constant 10 : index
    %83 = memref.load %arg1[%c10] : memref<81xf32, #tpu.memory_space<smem>>
    %c11 = arith.constant 11 : index
    %84 = memref.load %arg1[%c11] : memref<81xf32, #tpu.memory_space<smem>>
    %85 = vector.extract_strided_slice %25 {offsets = [0, 0], sizes = [2, 20], strides = [1, 1]} : vector<2x21xf32> to vector<2x20xf32>
    %86 = vector.broadcast %83 : f32 to vector<2x20xf32>
    %87 = arith.mulf %86, %85 : vector<2x20xf32>
    %88 = vector.extract_strided_slice %25 {offsets = [0, 1], sizes = [2, 20], strides = [1, 1]} : vector<2x21xf32> to vector<2x20xf32>
    %89 = vector.broadcast %84 : f32 to vector<2x20xf32>
    %90 = arith.mulf %89, %88 : vector<2x20xf32>
    %91 = arith.addf %87, %90 : vector<2x20xf32>
    %92 = arith.addf %82, %91 : vector<2x20xf32>
    %c12 = arith.constant 12 : index
    %93 = memref.load %arg1[%c12] : memref<81xf32, #tpu.memory_space<smem>>
    %c13 = arith.constant 13 : index
    %94 = memref.load %arg1[%c13] : memref<81xf32, #tpu.memory_space<smem>>
    %95 = vector.extract_strided_slice %27 {offsets = [0, 0], sizes = [2, 20], strides = [1, 1]} : vector<2x21xf32> to vector<2x20xf32>
    %96 = vector.broadcast %93 : f32 to vector<2x20xf32>
    %97 = arith.mulf %96, %95 : vector<2x20xf32>
    %98 = vector.extract_strided_slice %27 {offsets = [0, 1], sizes = [2, 20], strides = [1, 1]} : vector<2x21xf32> to vector<2x20xf32>
    %99 = vector.broadcast %94 : f32 to vector<2x20xf32>
    %100 = arith.mulf %99, %98 : vector<2x20xf32>
    %101 = arith.addf %97, %100 : vector<2x20xf32>
    %102 = arith.addf %92, %101 : vector<2x20xf32>
    %c14 = arith.constant 14 : index
    %103 = memref.load %arg1[%c14] : memref<81xf32, #tpu.memory_space<smem>>
    %c15 = arith.constant 15 : index
    %104 = memref.load %arg1[%c15] : memref<81xf32, #tpu.memory_space<smem>>
    %105 = vector.extract_strided_slice %29 {offsets = [0, 0], sizes = [2, 20], strides = [1, 1]} : vector<2x21xf32> to vector<2x20xf32>
    %106 = vector.broadcast %103 : f32 to vector<2x20xf32>
    %107 = arith.mulf %106, %105 : vector<2x20xf32>
    %108 = vector.extract_strided_slice %29 {offsets = [0, 1], sizes = [2, 20], strides = [1, 1]} : vector<2x21xf32> to vector<2x20xf32>
    %109 = vector.broadcast %104 : f32 to vector<2x20xf32>
    %110 = arith.mulf %109, %108 : vector<2x20xf32>
    %111 = arith.addf %107, %110 : vector<2x20xf32>
    %112 = arith.addf %102, %111 : vector<2x20xf32>
    %c69 = arith.constant 69 : index
    %113 = memref.load %arg1[%c69] : memref<81xf32, #tpu.memory_space<smem>>
    %114 = vector.broadcast %113 : f32 to vector<2x20xf32>
    %115 = arith.addf %112, %114 : vector<2x20xf32>
    %cst_40 = arith.constant 0.000000e+00 : f32
    %116 = vector.broadcast %cst_40 : f32 to vector<2x20xf32>
    %117 = arith.maximumf %115, %116 : vector<2x20xf32>
    %c16 = arith.constant 16 : index
    %118 = memref.load %arg1[%c16] : memref<81xf32, #tpu.memory_space<smem>>
    %c17 = arith.constant 17 : index
    %119 = memref.load %arg1[%c17] : memref<81xf32, #tpu.memory_space<smem>>
    %120 = vector.extract_strided_slice %73 {offsets = [0, 0], sizes = [2, 19], strides = [1, 1]} : vector<2x20xf32> to vector<2x19xf32>
    %121 = vector.broadcast %118 : f32 to vector<2x19xf32>
    %122 = arith.mulf %121, %120 : vector<2x19xf32>
    %123 = vector.extract_strided_slice %73 {offsets = [0, 1], sizes = [2, 19], strides = [1, 1]} : vector<2x20xf32> to vector<2x19xf32>
    %124 = vector.broadcast %119 : f32 to vector<2x19xf32>
    %125 = arith.mulf %124, %123 : vector<2x19xf32>
    %126 = arith.addf %122, %125 : vector<2x19xf32>
    %c18 = arith.constant 18 : index
    %127 = memref.load %arg1[%c18] : memref<81xf32, #tpu.memory_space<smem>>
    %c19 = arith.constant 19 : index
    %128 = memref.load %arg1[%c19] : memref<81xf32, #tpu.memory_space<smem>>
    %129 = vector.extract_strided_slice %117 {offsets = [0, 0], sizes = [2, 19], strides = [1, 1]} : vector<2x20xf32> to vector<2x19xf32>
    %130 = vector.broadcast %127 : f32 to vector<2x19xf32>
    %131 = arith.mulf %130, %129 : vector<2x19xf32>
    %132 = vector.extract_strided_slice %117 {offsets = [0, 1], sizes = [2, 19], strides = [1, 1]} : vector<2x20xf32> to vector<2x19xf32>
    %133 = vector.broadcast %128 : f32 to vector<2x19xf32>
    %134 = arith.mulf %133, %132 : vector<2x19xf32>
    %135 = arith.addf %131, %134 : vector<2x19xf32>
    %136 = arith.addf %126, %135 : vector<2x19xf32>
    %c70 = arith.constant 70 : index
    %137 = memref.load %arg1[%c70] : memref<81xf32, #tpu.memory_space<smem>>
    %138 = vector.broadcast %137 : f32 to vector<2x19xf32>
    %139 = arith.addf %136, %138 : vector<2x19xf32>
    %cst_41 = arith.constant 0.000000e+00 : f32
    %140 = vector.broadcast %cst_41 : f32 to vector<2x19xf32>
    %141 = arith.maximumf %139, %140 : vector<2x19xf32>
    %c20 = arith.constant 20 : index
    %142 = memref.load %arg1[%c20] : memref<81xf32, #tpu.memory_space<smem>>
    %c21 = arith.constant 21 : index
    %143 = memref.load %arg1[%c21] : memref<81xf32, #tpu.memory_space<smem>>
    %144 = vector.extract_strided_slice %73 {offsets = [0, 0], sizes = [2, 19], strides = [1, 1]} : vector<2x20xf32> to vector<2x19xf32>
    %145 = vector.broadcast %142 : f32 to vector<2x19xf32>
    %146 = arith.mulf %145, %144 : vector<2x19xf32>
    %147 = vector.extract_strided_slice %73 {offsets = [0, 1], sizes = [2, 19], strides = [1, 1]} : vector<2x20xf32> to vector<2x19xf32>
    %148 = vector.broadcast %143 : f32 to vector<2x19xf32>
    %149 = arith.mulf %148, %147 : vector<2x19xf32>
    %150 = arith.addf %146, %149 : vector<2x19xf32>
    %c22 = arith.constant 22 : index
    %151 = memref.load %arg1[%c22] : memref<81xf32, #tpu.memory_space<smem>>
    %c23 = arith.constant 23 : index
    %152 = memref.load %arg1[%c23] : memref<81xf32, #tpu.memory_space<smem>>
    %153 = vector.extract_strided_slice %117 {offsets = [0, 0], sizes = [2, 19], strides = [1, 1]} : vector<2x20xf32> to vector<2x19xf32>
    %154 = vector.broadcast %151 : f32 to vector<2x19xf32>
    %155 = arith.mulf %154, %153 : vector<2x19xf32>
    %156 = vector.extract_strided_slice %117 {offsets = [0, 1], sizes = [2, 19], strides = [1, 1]} : vector<2x20xf32> to vector<2x19xf32>
    %157 = vector.broadcast %152 : f32 to vector<2x19xf32>
    %158 = arith.mulf %157, %156 : vector<2x19xf32>
    %159 = arith.addf %155, %158 : vector<2x19xf32>
    %160 = arith.addf %150, %159 : vector<2x19xf32>
    %c71 = arith.constant 71 : index
    %161 = memref.load %arg1[%c71] : memref<81xf32, #tpu.memory_space<smem>>
    %162 = vector.broadcast %161 : f32 to vector<2x19xf32>
    %163 = arith.addf %160, %162 : vector<2x19xf32>
    %cst_42 = arith.constant 0.000000e+00 : f32
    %164 = vector.broadcast %cst_42 : f32 to vector<2x19xf32>
    %165 = arith.maximumf %163, %164 : vector<2x19xf32>
    %c24 = arith.constant 24 : index
    %166 = memref.load %arg1[%c24] : memref<81xf32, #tpu.memory_space<smem>>
    %c25 = arith.constant 25 : index
    %167 = memref.load %arg1[%c25] : memref<81xf32, #tpu.memory_space<smem>>
    %168 = vector.extract_strided_slice %141 {offsets = [0, 0], sizes = [2, 17], strides = [1, 1]} : vector<2x19xf32> to vector<2x17xf32>
    %169 = vector.broadcast %166 : f32 to vector<2x17xf32>
    %170 = arith.mulf %169, %168 : vector<2x17xf32>
    %171 = vector.extract_strided_slice %141 {offsets = [0, 2], sizes = [2, 17], strides = [1, 1]} : vector<2x19xf32> to vector<2x17xf32>
    %172 = vector.broadcast %167 : f32 to vector<2x17xf32>
    %173 = arith.mulf %172, %171 : vector<2x17xf32>
    %174 = arith.addf %170, %173 : vector<2x17xf32>
    %c26 = arith.constant 26 : index
    %175 = memref.load %arg1[%c26] : memref<81xf32, #tpu.memory_space<smem>>
    %c27 = arith.constant 27 : index
    %176 = memref.load %arg1[%c27] : memref<81xf32, #tpu.memory_space<smem>>
    %177 = vector.extract_strided_slice %165 {offsets = [0, 0], sizes = [2, 17], strides = [1, 1]} : vector<2x19xf32> to vector<2x17xf32>
    %178 = vector.broadcast %175 : f32 to vector<2x17xf32>
    %179 = arith.mulf %178, %177 : vector<2x17xf32>
    %180 = vector.extract_strided_slice %165 {offsets = [0, 2], sizes = [2, 17], strides = [1, 1]} : vector<2x19xf32> to vector<2x17xf32>
    %181 = vector.broadcast %176 : f32 to vector<2x17xf32>
    %182 = arith.mulf %181, %180 : vector<2x17xf32>
    %183 = arith.addf %179, %182 : vector<2x17xf32>
    %184 = arith.addf %174, %183 : vector<2x17xf32>
    %c72 = arith.constant 72 : index
    %185 = memref.load %arg1[%c72] : memref<81xf32, #tpu.memory_space<smem>>
    %186 = vector.broadcast %185 : f32 to vector<2x17xf32>
    %187 = arith.addf %184, %186 : vector<2x17xf32>
    %cst_43 = arith.constant 0.000000e+00 : f32
    %188 = vector.broadcast %cst_43 : f32 to vector<2x17xf32>
    %189 = arith.maximumf %187, %188 : vector<2x17xf32>
    %c28 = arith.constant 28 : index
    %190 = memref.load %arg1[%c28] : memref<81xf32, #tpu.memory_space<smem>>
    %c29 = arith.constant 29 : index
    %191 = memref.load %arg1[%c29] : memref<81xf32, #tpu.memory_space<smem>>
    %192 = vector.extract_strided_slice %141 {offsets = [0, 0], sizes = [2, 17], strides = [1, 1]} : vector<2x19xf32> to vector<2x17xf32>
    %193 = vector.broadcast %190 : f32 to vector<2x17xf32>
    %194 = arith.mulf %193, %192 : vector<2x17xf32>
    %195 = vector.extract_strided_slice %141 {offsets = [0, 2], sizes = [2, 17], strides = [1, 1]} : vector<2x19xf32> to vector<2x17xf32>
    %196 = vector.broadcast %191 : f32 to vector<2x17xf32>
    %197 = arith.mulf %196, %195 : vector<2x17xf32>
    %198 = arith.addf %194, %197 : vector<2x17xf32>
    %c30 = arith.constant 30 : index
    %199 = memref.load %arg1[%c30] : memref<81xf32, #tpu.memory_space<smem>>
    %c31 = arith.constant 31 : index
    %200 = memref.load %arg1[%c31] : memref<81xf32, #tpu.memory_space<smem>>
    %201 = vector.extract_strided_slice %165 {offsets = [0, 0], sizes = [2, 17], strides = [1, 1]} : vector<2x19xf32> to vector<2x17xf32>
    %202 = vector.broadcast %199 : f32 to vector<2x17xf32>
    %203 = arith.mulf %202, %201 : vector<2x17xf32>
    %204 = vector.extract_strided_slice %165 {offsets = [0, 2], sizes = [2, 17], strides = [1, 1]} : vector<2x19xf32> to vector<2x17xf32>
    %205 = vector.broadcast %200 : f32 to vector<2x17xf32>
    %206 = arith.mulf %205, %204 : vector<2x17xf32>
    %207 = arith.addf %203, %206 : vector<2x17xf32>
    %208 = arith.addf %198, %207 : vector<2x17xf32>
    %c73 = arith.constant 73 : index
    %209 = memref.load %arg1[%c73] : memref<81xf32, #tpu.memory_space<smem>>
    %210 = vector.broadcast %209 : f32 to vector<2x17xf32>
    %211 = arith.addf %208, %210 : vector<2x17xf32>
    %cst_44 = arith.constant 0.000000e+00 : f32
    %212 = vector.broadcast %cst_44 : f32 to vector<2x17xf32>
    %213 = arith.maximumf %211, %212 : vector<2x17xf32>
    %c32 = arith.constant 32 : index
    %214 = memref.load %arg1[%c32] : memref<81xf32, #tpu.memory_space<smem>>
    %c33 = arith.constant 33 : index
    %215 = memref.load %arg1[%c33] : memref<81xf32, #tpu.memory_space<smem>>
    %216 = vector.extract_strided_slice %189 {offsets = [0, 0], sizes = [2, 13], strides = [1, 1]} : vector<2x17xf32> to vector<2x13xf32>
    %217 = vector.broadcast %214 : f32 to vector<2x13xf32>
    %218 = arith.mulf %217, %216 : vector<2x13xf32>
    %219 = vector.extract_strided_slice %189 {offsets = [0, 4], sizes = [2, 13], strides = [1, 1]} : vector<2x17xf32> to vector<2x13xf32>
    %220 = vector.broadcast %215 : f32 to vector<2x13xf32>
    %221 = arith.mulf %220, %219 : vector<2x13xf32>
    %222 = arith.addf %218, %221 : vector<2x13xf32>
    %c34 = arith.constant 34 : index
    %223 = memref.load %arg1[%c34] : memref<81xf32, #tpu.memory_space<smem>>
    %c35 = arith.constant 35 : index
    %224 = memref.load %arg1[%c35] : memref<81xf32, #tpu.memory_space<smem>>
    %225 = vector.extract_strided_slice %213 {offsets = [0, 0], sizes = [2, 13], strides = [1, 1]} : vector<2x17xf32> to vector<2x13xf32>
    %226 = vector.broadcast %223 : f32 to vector<2x13xf32>
    %227 = arith.mulf %226, %225 : vector<2x13xf32>
    %228 = vector.extract_strided_slice %213 {offsets = [0, 4], sizes = [2, 13], strides = [1, 1]} : vector<2x17xf32> to vector<2x13xf32>
    %229 = vector.broadcast %224 : f32 to vector<2x13xf32>
    %230 = arith.mulf %229, %228 : vector<2x13xf32>
    %231 = arith.addf %227, %230 : vector<2x13xf32>
    %232 = arith.addf %222, %231 : vector<2x13xf32>
    %c74 = arith.constant 74 : index
    %233 = memref.load %arg1[%c74] : memref<81xf32, #tpu.memory_space<smem>>
    %234 = vector.broadcast %233 : f32 to vector<2x13xf32>
    %235 = arith.addf %232, %234 : vector<2x13xf32>
    %cst_45 = arith.constant 0.000000e+00 : f32
    %236 = vector.broadcast %cst_45 : f32 to vector<2x13xf32>
    %237 = arith.maximumf %235, %236 : vector<2x13xf32>
    %c36 = arith.constant 36 : index
    %238 = memref.load %arg1[%c36] : memref<81xf32, #tpu.memory_space<smem>>
    %c37 = arith.constant 37 : index
    %239 = memref.load %arg1[%c37] : memref<81xf32, #tpu.memory_space<smem>>
    %240 = vector.extract_strided_slice %189 {offsets = [0, 0], sizes = [2, 13], strides = [1, 1]} : vector<2x17xf32> to vector<2x13xf32>
    %241 = vector.broadcast %238 : f32 to vector<2x13xf32>
    %242 = arith.mulf %241, %240 : vector<2x13xf32>
    %243 = vector.extract_strided_slice %189 {offsets = [0, 4], sizes = [2, 13], strides = [1, 1]} : vector<2x17xf32> to vector<2x13xf32>
    %244 = vector.broadcast %239 : f32 to vector<2x13xf32>
    %245 = arith.mulf %244, %243 : vector<2x13xf32>
    %246 = arith.addf %242, %245 : vector<2x13xf32>
    %c38 = arith.constant 38 : index
    %247 = memref.load %arg1[%c38] : memref<81xf32, #tpu.memory_space<smem>>
    %c39 = arith.constant 39 : index
    %248 = memref.load %arg1[%c39] : memref<81xf32, #tpu.memory_space<smem>>
    %249 = vector.extract_strided_slice %213 {offsets = [0, 0], sizes = [2, 13], strides = [1, 1]} : vector<2x17xf32> to vector<2x13xf32>
    %250 = vector.broadcast %247 : f32 to vector<2x13xf32>
    %251 = arith.mulf %250, %249 : vector<2x13xf32>
    %252 = vector.extract_strided_slice %213 {offsets = [0, 4], sizes = [2, 13], strides = [1, 1]} : vector<2x17xf32> to vector<2x13xf32>
    %253 = vector.broadcast %248 : f32 to vector<2x13xf32>
    %254 = arith.mulf %253, %252 : vector<2x13xf32>
    %255 = arith.addf %251, %254 : vector<2x13xf32>
    %256 = arith.addf %246, %255 : vector<2x13xf32>
    %c75 = arith.constant 75 : index
    %257 = memref.load %arg1[%c75] : memref<81xf32, #tpu.memory_space<smem>>
    %258 = vector.broadcast %257 : f32 to vector<2x13xf32>
    %259 = arith.addf %256, %258 : vector<2x13xf32>
    %cst_46 = arith.constant 0.000000e+00 : f32
    %260 = vector.broadcast %cst_46 : f32 to vector<2x13xf32>
    %261 = arith.maximumf %259, %260 : vector<2x13xf32>
    %c40 = arith.constant 40 : index
    %262 = memref.load %arg1[%c40] : memref<81xf32, #tpu.memory_space<smem>>
    %c41 = arith.constant 41 : index
    %263 = memref.load %arg1[%c41] : memref<81xf32, #tpu.memory_space<smem>>
    %264 = vector.extract_strided_slice %189 {offsets = [0, 0], sizes = [2, 13], strides = [1, 1]} : vector<2x17xf32> to vector<2x13xf32>
    %265 = vector.broadcast %262 : f32 to vector<2x13xf32>
    %266 = arith.mulf %265, %264 : vector<2x13xf32>
    %267 = vector.extract_strided_slice %189 {offsets = [0, 4], sizes = [2, 13], strides = [1, 1]} : vector<2x17xf32> to vector<2x13xf32>
    %268 = vector.broadcast %263 : f32 to vector<2x13xf32>
    %269 = arith.mulf %268, %267 : vector<2x13xf32>
    %270 = arith.addf %266, %269 : vector<2x13xf32>
    %c42 = arith.constant 42 : index
    %271 = memref.load %arg1[%c42] : memref<81xf32, #tpu.memory_space<smem>>
    %c43 = arith.constant 43 : index
    %272 = memref.load %arg1[%c43] : memref<81xf32, #tpu.memory_space<smem>>
    %273 = vector.extract_strided_slice %213 {offsets = [0, 0], sizes = [2, 13], strides = [1, 1]} : vector<2x17xf32> to vector<2x13xf32>
    %274 = vector.broadcast %271 : f32 to vector<2x13xf32>
    %275 = arith.mulf %274, %273 : vector<2x13xf32>
    %276 = vector.extract_strided_slice %213 {offsets = [0, 4], sizes = [2, 13], strides = [1, 1]} : vector<2x17xf32> to vector<2x13xf32>
    %277 = vector.broadcast %272 : f32 to vector<2x13xf32>
    %278 = arith.mulf %277, %276 : vector<2x13xf32>
    %279 = arith.addf %275, %278 : vector<2x13xf32>
    %280 = arith.addf %270, %279 : vector<2x13xf32>
    %c76 = arith.constant 76 : index
    %281 = memref.load %arg1[%c76] : memref<81xf32, #tpu.memory_space<smem>>
    %282 = vector.broadcast %281 : f32 to vector<2x13xf32>
    %283 = arith.addf %280, %282 : vector<2x13xf32>
    %cst_47 = arith.constant 0.000000e+00 : f32
    %284 = vector.broadcast %cst_47 : f32 to vector<2x13xf32>
    %285 = arith.maximumf %283, %284 : vector<2x13xf32>
    %c44 = arith.constant 44 : index
    %286 = memref.load %arg1[%c44] : memref<81xf32, #tpu.memory_space<smem>>
    %c45 = arith.constant 45 : index
    %287 = memref.load %arg1[%c45] : memref<81xf32, #tpu.memory_space<smem>>
    %288 = vector.extract_strided_slice %237 {offsets = [0, 0], sizes = [2, 5], strides = [1, 1]} : vector<2x13xf32> to vector<2x5xf32>
    %289 = vector.broadcast %286 : f32 to vector<2x5xf32>
    %290 = arith.mulf %289, %288 : vector<2x5xf32>
    %291 = vector.extract_strided_slice %237 {offsets = [0, 8], sizes = [2, 5], strides = [1, 1]} : vector<2x13xf32> to vector<2x5xf32>
    %292 = vector.broadcast %287 : f32 to vector<2x5xf32>
    %293 = arith.mulf %292, %291 : vector<2x5xf32>
    %294 = arith.addf %290, %293 : vector<2x5xf32>
    %c46 = arith.constant 46 : index
    %295 = memref.load %arg1[%c46] : memref<81xf32, #tpu.memory_space<smem>>
    %c47 = arith.constant 47 : index
    %296 = memref.load %arg1[%c47] : memref<81xf32, #tpu.memory_space<smem>>
    %297 = vector.extract_strided_slice %261 {offsets = [0, 0], sizes = [2, 5], strides = [1, 1]} : vector<2x13xf32> to vector<2x5xf32>
    %298 = vector.broadcast %295 : f32 to vector<2x5xf32>
    %299 = arith.mulf %298, %297 : vector<2x5xf32>
    %300 = vector.extract_strided_slice %261 {offsets = [0, 8], sizes = [2, 5], strides = [1, 1]} : vector<2x13xf32> to vector<2x5xf32>
    %301 = vector.broadcast %296 : f32 to vector<2x5xf32>
    %302 = arith.mulf %301, %300 : vector<2x5xf32>
    %303 = arith.addf %299, %302 : vector<2x5xf32>
    %304 = arith.addf %294, %303 : vector<2x5xf32>
    %c48 = arith.constant 48 : index
    %305 = memref.load %arg1[%c48] : memref<81xf32, #tpu.memory_space<smem>>
    %c49 = arith.constant 49 : index
    %306 = memref.load %arg1[%c49] : memref<81xf32, #tpu.memory_space<smem>>
    %307 = vector.extract_strided_slice %285 {offsets = [0, 0], sizes = [2, 5], strides = [1, 1]} : vector<2x13xf32> to vector<2x5xf32>
    %308 = vector.broadcast %305 : f32 to vector<2x5xf32>
    %309 = arith.mulf %308, %307 : vector<2x5xf32>
    %310 = vector.extract_strided_slice %285 {offsets = [0, 8], sizes = [2, 5], strides = [1, 1]} : vector<2x13xf32> to vector<2x5xf32>
    %311 = vector.broadcast %306 : f32 to vector<2x5xf32>
    %312 = arith.mulf %311, %310 : vector<2x5xf32>
    %313 = arith.addf %309, %312 : vector<2x5xf32>
    %314 = arith.addf %304, %313 : vector<2x5xf32>
    %c77 = arith.constant 77 : index
    %315 = memref.load %arg1[%c77] : memref<81xf32, #tpu.memory_space<smem>>
    %316 = vector.broadcast %315 : f32 to vector<2x5xf32>
    %317 = arith.addf %314, %316 : vector<2x5xf32>
    %cst_48 = arith.constant 0.000000e+00 : f32
    %318 = vector.broadcast %cst_48 : f32 to vector<2x5xf32>
    %319 = arith.maximumf %317, %318 : vector<2x5xf32>
    %c50 = arith.constant 50 : index
    %320 = memref.load %arg1[%c50] : memref<81xf32, #tpu.memory_space<smem>>
    %c51 = arith.constant 51 : index
    %321 = memref.load %arg1[%c51] : memref<81xf32, #tpu.memory_space<smem>>
    %322 = vector.extract_strided_slice %237 {offsets = [0, 0], sizes = [2, 5], strides = [1, 1]} : vector<2x13xf32> to vector<2x5xf32>
    %323 = vector.broadcast %320 : f32 to vector<2x5xf32>
    %324 = arith.mulf %323, %322 : vector<2x5xf32>
    %325 = vector.extract_strided_slice %237 {offsets = [0, 8], sizes = [2, 5], strides = [1, 1]} : vector<2x13xf32> to vector<2x5xf32>
    %326 = vector.broadcast %321 : f32 to vector<2x5xf32>
    %327 = arith.mulf %326, %325 : vector<2x5xf32>
    %328 = arith.addf %324, %327 : vector<2x5xf32>
    %c52 = arith.constant 52 : index
    %329 = memref.load %arg1[%c52] : memref<81xf32, #tpu.memory_space<smem>>
    %c53 = arith.constant 53 : index
    %330 = memref.load %arg1[%c53] : memref<81xf32, #tpu.memory_space<smem>>
    %331 = vector.extract_strided_slice %261 {offsets = [0, 0], sizes = [2, 5], strides = [1, 1]} : vector<2x13xf32> to vector<2x5xf32>
    %332 = vector.broadcast %329 : f32 to vector<2x5xf32>
    %333 = arith.mulf %332, %331 : vector<2x5xf32>
    %334 = vector.extract_strided_slice %261 {offsets = [0, 8], sizes = [2, 5], strides = [1, 1]} : vector<2x13xf32> to vector<2x5xf32>
    %335 = vector.broadcast %330 : f32 to vector<2x5xf32>
    %336 = arith.mulf %335, %334 : vector<2x5xf32>
    %337 = arith.addf %333, %336 : vector<2x5xf32>
    %338 = arith.addf %328, %337 : vector<2x5xf32>
    %c54 = arith.constant 54 : index
    %339 = memref.load %arg1[%c54] : memref<81xf32, #tpu.memory_space<smem>>
    %c55 = arith.constant 55 : index
    %340 = memref.load %arg1[%c55] : memref<81xf32, #tpu.memory_space<smem>>
    %341 = vector.extract_strided_slice %285 {offsets = [0, 0], sizes = [2, 5], strides = [1, 1]} : vector<2x13xf32> to vector<2x5xf32>
    %342 = vector.broadcast %339 : f32 to vector<2x5xf32>
    %343 = arith.mulf %342, %341 : vector<2x5xf32>
    %344 = vector.extract_strided_slice %285 {offsets = [0, 8], sizes = [2, 5], strides = [1, 1]} : vector<2x13xf32> to vector<2x5xf32>
    %345 = vector.broadcast %340 : f32 to vector<2x5xf32>
    %346 = arith.mulf %345, %344 : vector<2x5xf32>
    %347 = arith.addf %343, %346 : vector<2x5xf32>
    %348 = arith.addf %338, %347 : vector<2x5xf32>
    %c78 = arith.constant 78 : index
    %349 = memref.load %arg1[%c78] : memref<81xf32, #tpu.memory_space<smem>>
    %350 = vector.broadcast %349 : f32 to vector<2x5xf32>
    %351 = arith.addf %348, %350 : vector<2x5xf32>
    %cst_49 = arith.constant 0.000000e+00 : f32
    %352 = vector.broadcast %cst_49 : f32 to vector<2x5xf32>
    %353 = arith.maximumf %351, %352 : vector<2x5xf32>
    %c56 = arith.constant 56 : index
    %354 = memref.load %arg1[%c56] : memref<81xf32, #tpu.memory_space<smem>>
    %c57 = arith.constant 57 : index
    %355 = memref.load %arg1[%c57] : memref<81xf32, #tpu.memory_space<smem>>
    %356 = vector.extract_strided_slice %237 {offsets = [0, 0], sizes = [2, 5], strides = [1, 1]} : vector<2x13xf32> to vector<2x5xf32>
    %357 = vector.broadcast %354 : f32 to vector<2x5xf32>
    %358 = arith.mulf %357, %356 : vector<2x5xf32>
    %359 = vector.extract_strided_slice %237 {offsets = [0, 8], sizes = [2, 5], strides = [1, 1]} : vector<2x13xf32> to vector<2x5xf32>
    %360 = vector.broadcast %355 : f32 to vector<2x5xf32>
    %361 = arith.mulf %360, %359 : vector<2x5xf32>
    %362 = arith.addf %358, %361 : vector<2x5xf32>
    %c58 = arith.constant 58 : index
    %363 = memref.load %arg1[%c58] : memref<81xf32, #tpu.memory_space<smem>>
    %c59 = arith.constant 59 : index
    %364 = memref.load %arg1[%c59] : memref<81xf32, #tpu.memory_space<smem>>
    %365 = vector.extract_strided_slice %261 {offsets = [0, 0], sizes = [2, 5], strides = [1, 1]} : vector<2x13xf32> to vector<2x5xf32>
    %366 = vector.broadcast %363 : f32 to vector<2x5xf32>
    %367 = arith.mulf %366, %365 : vector<2x5xf32>
    %368 = vector.extract_strided_slice %261 {offsets = [0, 8], sizes = [2, 5], strides = [1, 1]} : vector<2x13xf32> to vector<2x5xf32>
    %369 = vector.broadcast %364 : f32 to vector<2x5xf32>
    %370 = arith.mulf %369, %368 : vector<2x5xf32>
    %371 = arith.addf %367, %370 : vector<2x5xf32>
    %372 = arith.addf %362, %371 : vector<2x5xf32>
    %c60 = arith.constant 60 : index
    %373 = memref.load %arg1[%c60] : memref<81xf32, #tpu.memory_space<smem>>
    %c61 = arith.constant 61 : index
    %374 = memref.load %arg1[%c61] : memref<81xf32, #tpu.memory_space<smem>>
    %375 = vector.extract_strided_slice %285 {offsets = [0, 0], sizes = [2, 5], strides = [1, 1]} : vector<2x13xf32> to vector<2x5xf32>
    %376 = vector.broadcast %373 : f32 to vector<2x5xf32>
    %377 = arith.mulf %376, %375 : vector<2x5xf32>
    %378 = vector.extract_strided_slice %285 {offsets = [0, 8], sizes = [2, 5], strides = [1, 1]} : vector<2x13xf32> to vector<2x5xf32>
    %379 = vector.broadcast %374 : f32 to vector<2x5xf32>
    %380 = arith.mulf %379, %378 : vector<2x5xf32>
    %381 = arith.addf %377, %380 : vector<2x5xf32>
    %382 = arith.addf %372, %381 : vector<2x5xf32>
    %c79 = arith.constant 79 : index
    %383 = memref.load %arg1[%c79] : memref<81xf32, #tpu.memory_space<smem>>
    %384 = vector.broadcast %383 : f32 to vector<2x5xf32>
    %385 = arith.addf %382, %384 : vector<2x5xf32>
    %cst_50 = arith.constant 0.000000e+00 : f32
    %386 = vector.broadcast %cst_50 : f32 to vector<2x5xf32>
    %387 = arith.maximumf %385, %386 : vector<2x5xf32>
    %c62 = arith.constant 62 : index
    %388 = memref.load %arg1[%c62] : memref<81xf32, #tpu.memory_space<smem>>
    %c63 = arith.constant 63 : index
    %389 = memref.load %arg1[%c63] : memref<81xf32, #tpu.memory_space<smem>>
    %390 = vector.extract_strided_slice %319 {offsets = [0, 0], sizes = [2, 1], strides = [1, 1]} : vector<2x5xf32> to vector<2x1xf32>
    %391 = vector.broadcast %388 : f32 to vector<2x1xf32>
    %392 = arith.mulf %391, %390 : vector<2x1xf32>
    %393 = vector.extract_strided_slice %319 {offsets = [0, 4], sizes = [2, 1], strides = [1, 1]} : vector<2x5xf32> to vector<2x1xf32>
    %394 = vector.broadcast %389 : f32 to vector<2x1xf32>
    %395 = arith.mulf %394, %393 : vector<2x1xf32>
    %396 = arith.addf %392, %395 : vector<2x1xf32>
    %c64 = arith.constant 64 : index
    %397 = memref.load %arg1[%c64] : memref<81xf32, #tpu.memory_space<smem>>
    %c65 = arith.constant 65 : index
    %398 = memref.load %arg1[%c65] : memref<81xf32, #tpu.memory_space<smem>>
    %399 = vector.extract_strided_slice %353 {offsets = [0, 0], sizes = [2, 1], strides = [1, 1]} : vector<2x5xf32> to vector<2x1xf32>
    %400 = vector.broadcast %397 : f32 to vector<2x1xf32>
    %401 = arith.mulf %400, %399 : vector<2x1xf32>
    %402 = vector.extract_strided_slice %353 {offsets = [0, 4], sizes = [2, 1], strides = [1, 1]} : vector<2x5xf32> to vector<2x1xf32>
    %403 = vector.broadcast %398 : f32 to vector<2x1xf32>
    %404 = arith.mulf %403, %402 : vector<2x1xf32>
    %405 = arith.addf %401, %404 : vector<2x1xf32>
    %406 = arith.addf %396, %405 : vector<2x1xf32>
    %c66 = arith.constant 66 : index
    %407 = memref.load %arg1[%c66] : memref<81xf32, #tpu.memory_space<smem>>
    %c67 = arith.constant 67 : index
    %408 = memref.load %arg1[%c67] : memref<81xf32, #tpu.memory_space<smem>>
    %409 = vector.extract_strided_slice %387 {offsets = [0, 0], sizes = [2, 1], strides = [1, 1]} : vector<2x5xf32> to vector<2x1xf32>
    %410 = vector.broadcast %407 : f32 to vector<2x1xf32>
    %411 = arith.mulf %410, %409 : vector<2x1xf32>
    %412 = vector.extract_strided_slice %387 {offsets = [0, 4], sizes = [2, 1], strides = [1, 1]} : vector<2x5xf32> to vector<2x1xf32>
    %413 = vector.broadcast %408 : f32 to vector<2x1xf32>
    %414 = arith.mulf %413, %412 : vector<2x1xf32>
    %415 = arith.addf %411, %414 : vector<2x1xf32>
    %416 = arith.addf %406, %415 : vector<2x1xf32>
    %c80 = arith.constant 80 : index
    %417 = memref.load %arg1[%c80] : memref<81xf32, #tpu.memory_space<smem>>
    %418 = vector.broadcast %417 : f32 to vector<2x1xf32>
    %419 = arith.addf %416, %418 : vector<2x1xf32>
    %420 = tpu.iota {dimensions = array<i32: 0>} : vector<2x2xi32>
    %421 = tpu.iota {dimensions = array<i32: 1>} : vector<2x2xi32>
    %422 = arith.cmpi eq, %420, %421 : vector<2x2xi32>
    %cst_51 = arith.constant 0.000000e+00 : f32
    %423 = vector.shape_cast %419 : vector<2x1xf32> to vector<2x1xf32>
    %424 = vector.broadcast %423 : vector<2x1xf32> to vector<2x2xf32>
    %425 = vector.broadcast %cst_51 : f32 to vector<2x2xf32>
    %426 = arith.select %422, %424, %425 : vector<2x2xi1>, vector<2x2xf32>
    %cst_52 = arith.constant dense<0.000000e+00> : vector<2xf32>
    %427 = vector.multi_reduction <add>, %426, %cst_52 [0] : vector<2x2xf32> to vector<2xf32>
    %428 = vector.shape_cast %427 : vector<2xf32> to vector<1x2xf32>
    %c0_53 = arith.constant 0 : index
    %c0_54 = arith.constant 0 : index
    %429 = vector.load %arg2[%c0_53, %c0_54] : memref<1x2xf32, #tpu.memory_space<vmem>>, vector<1x2xf32>
    tpu.vector_store %arg2[%c0_53, %c0_54], %428 {strides = array<i32>} : memref<1x2xf32, #tpu.memory_space<vmem>>, vector<1x2xf32>,
    return
  }
}

</mosaic_0001>

<bundles_post_ra>
// kernel: tpu_custom_call.1
= control target key start
LH: loop header
LB: loop body
LE: loop exit
PB: predicated region body
PF: predicated region fallthrough
CT: control target
= control target key end

     0   :  { %7 = vsyncpa [#allocation4], 0  ;;  %s837_s0 = inlined_call_operand.hbm [shape: f32[4,2,16], index: 0, kind: input, shape index: {}]   ;;  %s838_s1 = inlined_call_operand.hbm [shape: f32[81], index: 1, kind: input, shape index: {}]   ;;  %s839_s2 = inlined_call_operand.hbm [shape: f32[1,2], index: 2, kind: output, shape index: {}]  }
   0x1   :  { %8 = vsyncpa [#allocation6], 0 }
   0x2   :  { %9 = vsyncpa [#allocation5], 0  ;;  %s14_s11 = sshll.u32 %s837_s0, 4  ;;  %s726_s12 = smov [#allocation3]   ;;  %s15_s11 = int_to_ptr.hbm [resolvable:$true] %s14_s11 }
   0x3   :  { %s16_s13 = sshll.u32 %s726_s12, 4  ;;  %s28_s16 = sshll.u32 %s838_s1, 4  ;;  %s17_s13 = int_to_ptr.vmem [resolvable:$true] %s16_s13  ;;  %s29_s16 = int_to_ptr.hbm [resolvable:$true] %s28_s16 }
   0x4   :  { %s727_s17 = smov 32   ;;  %s728_s18 = smov 2  }
   0x5   :  { %22 = dma.hbm_to_vmem [thread:$0]  %s15_s11, 128, %s17_s13, [#allocation4], %s727_s17, %s727_s17, %s728_s18  }
   0x6   :  { %s729_s19 = smov [#allocation7]  }
   0x7   :  { %31 = dma.hbm_to_smem %s29_s16, 16, %s729_s19, [#allocation6]  }
   0x8   :  { %720 = dma.done.wait [#allocation4], 128  }
   0x9   :  { %721 = vsyncadd [#allocation4], 4294967168 }
   0xa   :  { %722 = dma.done.wait [#allocation6], 16  }
   0xb   :  { %723 = vsyncadd [#allocation6], 4294967280 }
   0xc   :  { %40 = sfence }
   0xd   :  { %v46_v0 = vld [vmem:[#allocation3] sm:$0x3]  ;;  %v62_v1 = vld [vmem:[#allocation3 + $0x4] sm:$0x3]  ;;  %s730_s0 = smov 5   ;;  %vm41_vm0 = vcmask 164864  }
   0xe   :  { %48 = vrot.lane.b32.xlu0 %v46_v0, %s730_s0  ;;  %64 = vrot.lane.b32.xlu1 %v62_v1, %s730_s0  ;;  %v54_v2 = vld [vmem:[#allocation3 + $0x2] sm:$0x3]  ;;  %v70_v3 = vld [vmem:[#allocation3 + $0x6] sm:$0x3]  ;;  %v731_v4 = vmov 0.0   ;;  %s575_s1 = sld [smem:[#allocation7 + $0x9]] }
   0xf   :  { %42 = vst.msk [vmem:[#allocation2] sm:$0x3] %vm41_vm0, %v731_v4  ;;  %vm51_vm1 = vcmask 164904   ;;  %s566_s20 = sld [smem:[#allocation7 + $0x1]]  ;;  %s732_s24 = smov 127   ;;  %vm538_vm3 = vcmask 9216  }
  0x10   :  { %43 = vst.msk [vmem:[#allocation2 + $0x2] sm:$0x3] %vm41_vm0, %v731_v4  ;;  %s579_s21 = sld [smem:[#allocation7 + $0xd]]  ;;  %vm546_vm4 = vcmask 8192  }
  0x11   :  { %44 = vst.msk [vmem:[#allocation2 + $0x4] sm:$0x3] %vm41_vm0, %v731_v4  ;;  %s577_s22 = sld [smem:[#allocation7 + $0xb]] }
  0x12   :  { %45 = vst.msk [vmem:[#allocation2 + $0x6] sm:$0x3] %vm41_vm0, %v731_v4  ;;  %s568_s23 = sld [smem:[#allocation7 + $0x3]] }
  0x13   :  { %s572_s25 = sld [smem:[#allocation7 + $0x7]] }
  0x14   :  { %v136_v7 = vstv %s575_s1  ;;  %s570_s26 = sld [smem:[#allocation7 + $0x5]] }
  0x15   :  { %v85_v8 = vstv %s566_s20  ;;  %s581_s27 = sld [smem:[#allocation7 + $0xf]] }
  0x16   :  { %56 = vrot.lane.b32.xlu0 %v54_v2, %s730_s0  ;;  %72 = vrot.lane.b32.xlu1 %v70_v3, %s730_s0  ;;  %v159_v15 = vstv %s579_s21  ;;  %s81_s28 = sld [smem:[#allocation7]] }
  0x17   :  { %v147_v16 = vstv %s577_s22  ;;  %s567_s29 = sld [smem:[#allocation7 + $0x2]]  ;;  %s733_s22 = smov 126  }
  0x18   :  { %v96_v17 = vstv %s568_s23  ;;  %s569_s30 = sld [smem:[#allocation7 + $0x4]] }
  0x19   :  { %v120_v23 = vstv %s572_s25  ;;  %s574_s3 = sld [smem:[#allocation7 + $0x8]] }
  0x1a   :  { %v108_v25 = vstv %s570_s26  ;;  %s576_s4 = sld [smem:[#allocation7 + $0xa]] }
  0x1b   :  { %v171_v27 = vstv %s581_s27  ;;  %s578_s5 = sld [smem:[#allocation7 + $0xc]] }
  0x1c   :  { %v83_v30 = vstv %s81_s28  ;;  %s580_s6 = sld [smem:[#allocation7 + $0xe]] }
  0x1d   :  { %v94_v31 = vstv %s567_s29  ;;  %s571_s7 = sld [smem:[#allocation7 + $0x6]] }
  0x1e   :  { %v106_v38 = vstv %s569_s30  ;;  %s582_s8 = sld [smem:[#allocation7 + $0x45]] }
  0x1f   :  { %v134_v44 = vstv %s574_s3  ;;  %s573_s9 = sld [smem:[#allocation7 + $0x44]] }
  0x20   :  { %v145_v45 = vstv %s576_s4  ;;  %s586_s10 = sld [smem:[#allocation7 + $0x13]] }
  0x21   :  { %v157_v46 = vstv %s578_s5  ;;  %s589_s11 = sld [smem:[#allocation7 + $0x15]] }
  0x22   :  { %v169_v49 = vstv %s580_s6  ;;  %s584_s12 = sld [smem:[#allocation7 + $0x11]]  ;;  %s734_s6 = smov 124  }
  0x23   :  { %v118_v59 = vstv %s571_s7  ;;  %s591_s13 = sld [smem:[#allocation7 + $0x17]] }
  0x24   :  { %v180_v62 = vstv %s582_s8  ;;  %s585_s14 = sld [smem:[#allocation7 + $0x12]] }
  0x25   :  { %v129_v4 = vstv %s573_s9  ;;  %s583_s15 = sld [smem:[#allocation7 + $0x10]] }
  0x26   :  { %s587_s16 = sld [smem:[#allocation7 + $0x46]] }
  0x27   :  { %s588_s17 = sld [smem:[#allocation7 + $0x14]] }
  0x28   :  { %s590_s18 = sld [smem:[#allocation7 + $0x16]] }
  0x29   :  { %s599_s19 = sld [smem:[#allocation7 + $0x1d]] }
  0x2a   :  { %s594_s0 = sld [smem:[#allocation7 + $0x19]] }
  0x2b   :  { %s592_s1 = sld [smem:[#allocation7 + $0x47]] }
  0x2c   :  { %s596_s20 = sld [smem:[#allocation7 + $0x1b]] }
  0x2d   :  { %s601_s21 = sld [smem:[#allocation7 + $0x1f]] }
  0x2e   :  { %s593_s23 = sld [smem:[#allocation7 + $0x18]] }
  0x2f   :  { %s597_s25 = sld [smem:[#allocation7 + $0x48]] }
  0x30   :  { %s598_s26 = sld [smem:[#allocation7 + $0x1c]] }
  0x31   :  { %s600_s27 = sld [smem:[#allocation7 + $0x1e]] }
  0x32   :  { %s609_s28 = sld [smem:[#allocation7 + $0x25]] }
  0x33   :  { %s604_s29 = sld [smem:[#allocation7 + $0x21]] }
  0x34   :  { %s602_s30 = sld [smem:[#allocation7 + $0x49]] }
  0x35   :  { %s606_s3 = sld [smem:[#allocation7 + $0x23]] }
  0x36   :  { %s616_s4 = sld [smem:[#allocation7 + $0x2b]] }
  0x37   :  { %s611_s5 = sld [smem:[#allocation7 + $0x27]] }
  0x38   :  { %s614_s7 = sld [smem:[#allocation7 + $0x29]] }
  0x39   :  { %s608_s8 = sld [smem:[#allocation7 + $0x24]] }
  0x3a   :  { %s610_s9 = sld [smem:[#allocation7 + $0x26]] }
  0x80   :  { %v49_v5 = vpop.permute.xlu0 %48  ;;  %v65_v6 = vpop.permute.xlu1 %64 }
  0x81   :  { %52 = vst.msk [vmem:[#allocation2] sm:$0x3] %vm51_vm1, %v49_v5  ;;  %v198_v5 = vstv %s586_s10  ;;  %s612_s10 = sld [smem:[#allocation7 + $0x4b]] }
  0x82   :  { %68 = vst.msk [vmem:[#allocation2 + $0x4] sm:$0x3] %vm51_vm1, %v65_v6 }
  0x88   :  { %v57_v9 = vpop.permute.xlu0 %56  ;;  %v77_v10 = vld [vmem:[#allocation2] sm:$0x3]  ;;  %v73_v11 = vpop.permute.xlu1 %72 }
  0x89   :  { %60 = vst.msk [vmem:[#allocation2 + $0x2] sm:$0x3] %vm51_vm1, %v57_v9  ;;  %v137_v12 = vmul.f32 %v136_v7, %v77_v10  ;;  %v86_v13 = vmul.f32 %v85_v8, %v77_v10  ;;  %v79_v14 = vld [vmem:[#allocation2 + $0x4] sm:$0x3]  ;;  %v84_v32 = vmul.f32 %v83_v30, %v77_v10  ;;  %v135_v47 = vmul.f32 %v134_v44, %v77_v10 }
  0x8a   :  { %76 = vst.msk [vmem:[#allocation2 + $0x6] sm:$0x3] %vm51_vm1, %v73_v11  ;;  %v160_v18 = vmul.f32 %v159_v15, %v79_v14  ;;  %v109_v26 = vmul.f32 %v108_v25, %v79_v14  ;;  %v107_v39 = vmul.f32 %v106_v38, %v79_v14  ;;  %v158_v54 = vmul.f32 %v157_v46, %v79_v14 }
  0x8b   :  { %139 = vrot.lane.b32.xlu0 %v137_v12, %s732_s24  ;;  %88 = vrot.lane.b32.xlu2 %v86_v13, %s732_s24  ;;  %v214_v10 = vstv %s589_s11  ;;  %v187_v11 = vstv %s584_s12  ;;  %s603_s11 = sld [smem:[#allocation7 + $0x20]] }
  0x8c   :  { %v225_v15 = vstv %s591_s13  ;;  %v207_v25 = vstv %s587_s16  ;;  %v252_v44 = vstv %s596_s20  ;;  %s605_s12 = sld [smem:[#allocation7 + $0x22]] }
  0x8d   :  { %s621_s13 = sld [smem:[#allocation7 + $0x2f]] }
  0x8e   :  { %s615_s16 = sld [smem:[#allocation7 + $0x2a]] }
  0x8f   :  { %s630_s20 = sld [smem:[#allocation7 + $0x37]] }
  0x90   :  { %v78_v19 = vld [vmem:[#allocation2 + $0x2] sm:$0x3] }
  0x91   :  { %v148_v20 = vmul.f32 %v147_v16, %v78_v19  ;;  %v97_v21 = vmul.f32 %v96_v17, %v78_v19  ;;  %v80_v22 = vld [vmem:[#allocation2 + $0x6] sm:$0x3]  ;;  %v95_v33 = vmul.f32 %v94_v31, %v78_v19  ;;  %v146_v48 = vmul.f32 %v145_v45, %v78_v19 }
  0x92   :  { %v121_v24 = vmul.f32 %v120_v23, %v80_v22  ;;  %v172_v28 = vmul.f32 %v171_v27, %v80_v22  ;;  %v170_v56 = vmul.f32 %v169_v49, %v80_v22  ;;  %v119_v0 = vmul.f32 %v118_v59, %v80_v22 }
  0x93   :  { %150 = vrot.lane.b32.xlu1 %v148_v20, %s732_s24  ;;  %162 = vrot.lane.b32.xlu0 %v160_v18, %s732_s24  ;;  %v196_v17 = vstv %s585_s14  ;;  %v185_v18 = vstv %s583_s15  ;;  %s607_s14 = sld [smem:[#allocation7 + $0x4a]] }
  0x94   :  { %99 = vrot.lane.b32.xlu2 %v97_v21, %s732_s24  ;;  %v212_v27 = vstv %s588_s17  ;;  %v268_v31 = vstv %s599_s19  ;;  %v279_v45 = vstv %s601_s21  ;;  %s613_s15 = sld [smem:[#allocation7 + $0x28]] }
  0x95   :  { %v266_v59 = vstv %s598_s26  ;;  %s626_s17 = sld [smem:[#allocation7 + $0x33]] }
  0x96   :  { %s617_s19 = sld [smem:[#allocation7 + $0x4c]] }
  0x97   :  { %s628_s21 = sld [smem:[#allocation7 + $0x35]] }
  0x98   :  { %s618_s26 = sld [smem:[#allocation7 + $0x2c]] }
  0x9b   :  { %123 = vrot.lane.b32.xlu1 %v121_v24, %s732_s24 }
  0x9c   :  { %111 = vrot.lane.b32.xlu2 %v109_v26, %s732_s24 }
  0xa4   :  { %174 = vrot.lane.b32.xlu2 %v172_v28, %s732_s24  ;;  %v223_v28 = vstv %s590_s18  ;;  %s619_s18 = sld [smem:[#allocation7 + $0x2d]] }
  0xe5   :  { %v89_v29 = vpop.permute.xlu2 %88 }
  0xe6   :  { %v91_v35 = vadd.f32 %v89_v29, %v84_v32  ;;  %v241_v32 = vstv %s594_s0  ;;  %s735_s0 = smov 120  }
  0xee   :  { %v100_v34 = vpop.permute.xlu2 %99 }
  0xef   :  { %v102_v36 = vadd.f32 %v100_v34, %v95_v33 }
  0xf1   :  { %v103_v37 = vadd.f32 %v102_v36, %v91_v35 }
  0xf6   :  { %v112_v40 = vpop.permute.xlu2 %111 }
  0xf7   :  { %v114_v41 = vadd.f32 %v112_v40, %v107_v39 }
  0xf9   :  { %v115_v42 = vadd.f32 %v114_v41, %v103_v37  ;;  %v234_v41 = vstv %s592_s1  ;;  %s623_s1 = sld [smem:[#allocation7 + $0x31]] }
  0xfd   :  { %v140_v43 = vpop.permute.xlu0 %139 }
  0xfe   :  { %v142_v52 = vadd.f32 %v140_v43, %v135_v47  ;;  %v175_v55 = vpop.permute.xlu2 %174 }
  0xff   :  { %v177_v60 = vadd.f32 %v175_v55, %v170_v56 }
 0x105   :  { %v151_v50 = vpop.permute.xlu1 %150  ;;  %v163_v51 = vpop.permute.xlu0 %162 }
 0x106   :  { %v153_v53 = vadd.f32 %v151_v50, %v146_v48  ;;  %v165_v58 = vadd.f32 %v163_v51, %v158_v54  ;;  %v239_v50 = vstv %s593_s23  ;;  %s637_s23 = sld [smem:[#allocation7 + $0x3d]] }
 0x108   :  { %v154_v57 = vadd.f32 %v153_v53, %v142_v52 }
 0x10a   :  { %v166_v61 = vadd.f32 %v165_v58, %v154_v57  ;;  %v261_v57 = vstv %s597_s25  ;;  %s620_s25 = sld [smem:[#allocation7 + $0x2e]] }
 0x10c   :  { %v178_v63 = vadd.f32 %v177_v60, %v166_v61  ;;  %v277_v60 = vstv %s600_s27  ;;  %s627_s27 = sld [smem:[#allocation7 + $0x34]] }
 0x10d   :  { %v124_v1 = vpop.permute.xlu1 %123 }
 0x10e   :  { %v181_v2 = vadd.f32 %v180_v62, %v178_v63  ;;  %v126_v3 = vadd.f32 %v124_v1, %v119_v0  ;;  %v322_v63 = vstv %s609_s28  ;;  %v295_v0 = vstv %s604_s29  ;;  %s625_s28 = sld [smem:[#allocation7 + $0x32]] }
 0x10f   :  { %s622_s29 = sld [smem:[#allocation7 + $0x30]] }
 0x110   :  { %v182_v6 = vmax.f32 %v181_v2, 0.0  ;;  %v127_v7 = vadd.f32 %v126_v3, %v115_v42 }
 0x112   :  { %v130_v8 = vadd.f32 %v129_v4, %v127_v7  ;;  %v199_v9 = vmul.f32 %v198_v5, %v182_v6  ;;  %v226_v16 = vmul.f32 %v225_v15, %v182_v6  ;;  %v197_v20 = vmul.f32 %v196_v17, %v182_v6 }
 0x113   :  { %v224_v35 = vmul.f32 %v223_v28, %v182_v6 }
 0x114   :  { %v131_v12 = vmax.f32 %v130_v8, 0.0  ;;  %201 = vrot.lane.b32.xlu1 %v199_v9, %s732_s24  ;;  %v288_v9 = vstv %s602_s30  ;;  %s629_s30 = sld [smem:[#allocation7 + $0x36]] }
 0x116   :  { %v215_v13 = vmul.f32 %v214_v10, %v131_v12  ;;  %v188_v14 = vmul.f32 %v187_v11, %v131_v12  ;;  %v186_v21 = vmul.f32 %v185_v18, %v131_v12  ;;  %v213_v33 = vmul.f32 %v212_v27, %v131_v12 }
 0x117   :  { %v306_v12 = vstv %s606_s3  ;;  %s817_s3 = sld [smem:[#allocation7 + $0x3a]] }
 0x118   :  { %217 = vrot.lane.b32.xlu2 %v215_v13, %s732_s24  ;;  %190 = vrot.lane.b32.xlu0 %v188_v14, %s732_s24  ;;  %v360_v13 = vstv %s616_s4  ;;  %v333_v14 = vstv %s611_s5  ;;  %s624_s4 = sld [smem:[#allocation7 + $0x4d]] }
 0x119   :  { %s631_s5 = sld [smem:[#allocation7 + $0x4e]] }
 0x120   :  { %228 = vrot.lane.b32.xlu0 %v226_v16, %s732_s24  ;;  %s595_s24 = sld [smem:[#allocation7 + $0x1a]] }
 0x126   :  { %v250_v49 = vstv %s595_s24  ;;  %s633_s24 = sld [smem:[#allocation7 + $0x39]] }
 0x172   :  { %v218_v30 = vpop.permute.xlu2 %217 }
 0x173   :  { %v220_v37 = vadd.f32 %v218_v30, %v213_v33  ;;  %v342_v30 = vstv %s612_s10  ;;  %v304_v33 = vstv %s605_s12  ;;  %s821_s10 = sld [smem:[#allocation7 + $0x3f]] }
 0x174   :  { %s644_s12 = sld [smem:[#allocation7 + $0x43]] }
 0x186   :  { %v202_v19 = vpop.permute.xlu1 %201 }
 0x187   :  { %v204_v23 = vadd.f32 %v202_v19, %v197_v20  ;;  %v349_v19 = vstv %s614_s7  ;;  %s632_s7 = sld [smem:[#allocation7 + $0x38]] }
 0x18a   :  { %v191_v22 = vpop.permute.xlu0 %190 }
 0x18b   :  { %v193_v24 = vadd.f32 %v191_v22, %v186_v21  ;;  %v331_v22 = vstv %s610_s9  ;;  %s819_s9 = sld [smem:[#allocation7 + $0x41]] }
 0x18d   :  { %v205_v26 = vadd.f32 %v204_v23, %v193_v24  ;;  %v320_v23 = vstv %s608_s8  ;;  %s636_s8 = sld [smem:[#allocation7 + $0x3c]] }
 0x18f   :  { %v208_v29 = vadd.f32 %v207_v25, %v205_v26 }
 0x191   :  { %v209_v34 = vmax.f32 %v208_v29, 0.0 }
 0x192   :  { %v229_v36 = vpop.permute.xlu0 %228 }
 0x193   :  { %v231_v38 = vadd.f32 %v229_v36, %v224_v35  ;;  %v269_v39 = vmul.f32 %v268_v31, %v209_v34  ;;  %v242_v40 = vmul.f32 %v241_v32, %v209_v34  ;;  %v240_v53 = vmul.f32 %v239_v50, %v209_v34 }
 0x194   :  { %v267_v1 = vmul.f32 %v266_v59, %v209_v34  ;;  %v293_v32 = vstv %s603_s11  ;;  %v387_v35 = vstv %s621_s13  ;;  %v376_v50 = vstv %s619_s18  ;;  %s638_s11 = sld [smem:[#allocation7 + $0x4f]] }
 0x195   :  { %v232_v42 = vadd.f32 %v231_v38, %v220_v37  ;;  %271 = vrot.lane.b32.xlu0 %v269_v39, %s733_s22  ;;  %244 = vrot.lane.b32.xlu1 %v242_v40, %s733_s22  ;;  %v369_v59 = vstv %s617_s19  ;;  %s639_s13 = sld [smem:[#allocation7 + $0x3e]] }
 0x197   :  { %v235_v43 = vadd.f32 %v234_v41, %v232_v42 }
 0x199   :  { %v236_v46 = vmax.f32 %v235_v43, 0.0  ;;  %v315_v43 = vstv %s607_s14  ;;  %s641_s14 = sld [smem:[#allocation7 + $0x40]] }
 0x19b   :  { %v253_v47 = vmul.f32 %v252_v44, %v236_v46  ;;  %v280_v48 = vmul.f32 %v279_v45, %v236_v46  ;;  %v251_v52 = vmul.f32 %v250_v49, %v236_v46  ;;  %v278_v3 = vmul.f32 %v277_v60, %v236_v46 }
 0x19c   :  { %v358_v45 = vstv %s615_s16  ;;  %v347_v46 = vstv %s613_s15  ;;  %v415_v49 = vstv %s626_s17  ;;  %s643_s15 = sld [smem:[#allocation7 + $0x42]] }
 0x19d   :  { %255 = vrot.lane.b32.xlu2 %v253_v47, %s733_s22  ;;  %282 = vrot.lane.b32.xlu1 %v280_v48, %s733_s22  ;;  %s635_s22 = sld [smem:[#allocation7 + $0x3b]] }
 0x19e   :  { %s645_s16 = sld [smem:[#allocation7 + $0x50]] }
 0x1f7   :  { %v256_v51 = vpop.permute.xlu2 %255 }
 0x1f8   :  { %v258_v55 = vadd.f32 %v256_v51, %v251_v52 }
 0x207   :  { %v245_v54 = vpop.permute.xlu1 %244  ;;  %v272_v62 = vpop.permute.xlu0 %271 }
 0x208   :  { %v247_v56 = vadd.f32 %v245_v54, %v240_v53  ;;  %v274_v5 = vadd.f32 %v272_v62, %v267_v1  ;;  %v399_v62 = vstv %s623_s1  ;;  %v426_v1 = vstv %s628_s21 }
 0x20a   :  { %v259_v58 = vadd.f32 %v258_v55, %v247_v56 }
 0x20c   :  { %v262_v61 = vadd.f32 %v261_v57, %v259_v58 }
 0x20e   :  { %v775_v2 = vmax.f32 %v262_v61, 0.0 }
 0x20f   :  { %v283_v4 = vpop.permute.xlu1 %282 }
 0x210   :  { %v285_v6 = vadd.f32 %v283_v4, %v278_v3  ;;  %v323_v7 = vmul.f32 %v322_v63, %v775_v2  ;;  %v296_v8 = vmul.f32 %v295_v0, %v775_v2  ;;  %v350_v20 = vmul.f32 %v349_v19, %v775_v2 }
 0x211   :  { %v321_v26 = vmul.f32 %v320_v23, %v775_v2  ;;  %v294_v36 = vmul.f32 %v293_v32, %v775_v2  ;;  %v348_v53 = vmul.f32 %v347_v46, %v775_v2  ;;  %v438_v63 = vstv %s630_s20 }
 0x212   :  { %v286_v10 = vadd.f32 %v285_v6, %v274_v5  ;;  %325 = vrot.lane.b32.xlu1 %v323_v7, %s734_s6  ;;  %298 = vrot.lane.b32.xlu2 %v296_v8, %s734_s6  ;;  %v465_v5 = vstv %s635_s22  ;;  %v477_v6 = vstv %s637_s23 }
 0x213   :  { %v454_v7 = vstv %s633_s24  ;;  %v475_v46 = vstv %s636_s8 }
 0x214   :  { %v289_v11 = vadd.f32 %v288_v9, %v286_v10 }
 0x216   :  { %v290_v15 = vmax.f32 %v289_v11, 0.0  ;;  %v374_v11 = vstv %s618_s26 }
 0x218   :  { %v307_v16 = vmul.f32 %v306_v12, %v290_v15  ;;  %v361_v17 = vmul.f32 %v360_v13, %v290_v15  ;;  %v334_v18 = vmul.f32 %v333_v14, %v290_v15  ;;  %v332_v25 = vmul.f32 %v331_v22, %v290_v15 }
 0x219   :  { %v305_v38 = vmul.f32 %v304_v33, %v290_v15  ;;  %v359_v52 = vmul.f32 %v358_v45, %v290_v15  ;;  %v385_v13 = vstv %s620_s25 }
 0x21a   :  { %309 = vrot.lane.b32.xlu0 %v307_v16, %s734_s6  ;;  %363 = vrot.lane.b32.xlu1 %v361_v17, %s734_s6 }
 0x21b   :  { %336 = vrot.lane.b32.xlu2 %v334_v18, %s734_s6 }
 0x222   :  { %352 = vrot.lane.b32.xlu0 %v350_v20, %s734_s6  ;;  %v424_v20 = vstv %s627_s27 }
 0x26c   :  { %v299_v21 = vpop.permute.xlu2 %298 }
 0x26d   :  { %v301_v40 = vadd.f32 %v299_v21, %v294_v36  ;;  %v413_v21 = vstv %s625_s28 }
 0x275   :  { %v337_v24 = vpop.permute.xlu2 %336 }
 0x276   :  { %v339_v28 = vadd.f32 %v337_v24, %v332_v25 }
 0x284   :  { %v326_v27 = vpop.permute.xlu1 %325 }
 0x285   :  { %v328_v29 = vadd.f32 %v326_v27, %v321_v26 }
 0x287   :  { %v340_v31 = vadd.f32 %v339_v28, %v328_v29  ;;  %v397_v29 = vstv %s622_s29 }
 0x289   :  { %v343_v34 = vadd.f32 %v342_v30, %v340_v31  ;;  %v436_v30 = vstv %s629_s30 }
 0x28b   :  { %v788_v37 = vmax.f32 %v343_v34, 0.0 }
 0x28c   :  { %v310_v39 = vpop.permute.xlu0 %309  ;;  %v364_v48 = vpop.permute.xlu1 %363 }
 0x28d   :  { %v312_v41 = vadd.f32 %v310_v39, %v305_v38  ;;  %v388_v42 = vmul.f32 %v387_v35, %v788_v37  ;;  %v366_v55 = vadd.f32 %v364_v48, %v359_v52  ;;  %v427_v4 = vmul.f32 %v426_v1, %v788_v37 }
 0x28e   :  { %v466_v8 = vmul.f32 %v465_v5, %v788_v37  ;;  %v386_v15 = vmul.f32 %v385_v13, %v788_v37  ;;  %v425_v23 = vmul.f32 %v424_v20, %v788_v37  ;;  %v408_v38 = vstv %s624_s4 }
 0x28f   :  { %v313_v44 = vadd.f32 %v312_v41, %v301_v40  ;;  %390 = vrot.lane.b32.xlu0 %v388_v42, %s735_s0  ;;  %v447_v39 = vstv %s631_s5  ;;  %v452_v42 = vstv %s632_s7  ;;  %v504_v48 = vstv %s819_s9 }
 0x290   :  { %v491_v5 = vstv %s639_s13 }
 0x291   :  { %v316_v47 = vadd.f32 %v315_v43, %v313_v44  ;;  %v463_v43 = vstv %s817_s3 }
 0x293   :  { %v792_v51 = vmax.f32 %v316_v47, 0.0 }
 0x294   :  { %v353_v54 = vpop.permute.xlu0 %352 }
 0x295   :  { %v355_v56 = vadd.f32 %v353_v54, %v348_v53  ;;  %v416_v57 = vmul.f32 %v415_v49, %v792_v51  ;;  %v377_v58 = vmul.f32 %v376_v50, %v792_v51  ;;  %v455_v10 = vmul.f32 %v454_v7, %v792_v51 }
 0x296   :  { %v375_v14 = vmul.f32 %v374_v11, %v792_v51  ;;  %v414_v24 = vmul.f32 %v413_v21, %v792_v51  ;;  %v493_v49 = vstv %s821_s10  ;;  %v453_v50 = vmul.f32 %v452_v42, %v792_v51 }
 0x297   :  { %v367_v60 = vadd.f32 %v366_v55, %v355_v56  ;;  %418 = vrot.lane.b32.xlu1 %v416_v57, %s735_s0  ;;  %379 = vrot.lane.b32.xlu2 %v377_v58, %s735_s0  ;;  %v464_v54 = vmul.f32 %v463_v43, %v788_v37  ;;  %v486_v51 = vstv %s638_s11  ;;  %v527_v21 = vlaneseq }
 0x299   :  { %v370_v61 = vadd.f32 %v369_v59, %v367_v60 }
 0x29b   :  { %v799_v0 = vmax.f32 %v370_v61, 0.0 }
 0x29d   :  { %v400_v2 = vmul.f32 %v399_v62, %v799_v0  ;;  %v439_v3 = vmul.f32 %v438_v63, %v799_v0  ;;  %v478_v9 = vmul.f32 %v477_v6, %v799_v0  ;;  %v398_v31 = vmul.f32 %v397_v29, %v799_v0 }
 0x29e   :  { %v437_v32 = vmul.f32 %v436_v30, %v799_v0  ;;  %v476_v56 = vmul.f32 %v475_v46, %v799_v0  ;;  %v736_v0 = vmov 0   ;;  %v502_v6 = vstv %s641_s14 }
 0x29f   :  { %402 = vrot.lane.b32.xlu0 %v400_v2, %s735_s0  ;;  %441 = vrot.lane.b32.xlu1 %v439_v3, %s735_s0  ;;  %v516_v3 = vstv %s644_s12 }
 0x2a0   :  { %429 = vrot.lane.b32.xlu2 %v427_v4, %s735_s0  ;;  %659 = vset.pattern.permute.xlu0 %v736_v0 }
 0x2a1   :  { %658 = vset.pattern.permute.xlu2 %v736_v0 }
 0x2a7   :  { %468 = vrot.lane.b32.xlu0 %v466_v8, %s735_s0  ;;  %480 = vrot.lane.b32.xlu1 %v478_v9, %s735_s0 }
 0x2a8   :  { %457 = vrot.lane.b32.xlu2 %v455_v10, %s735_s0  ;;  %s555_s0 = sshll.u32 %s839_s2, 4  ;;  %s556_s0 = int_to_ptr.hbm [resolvable:$true] %s555_s0 }
 0x2f1   :  { %v380_v12 = vpop.permute.xlu2 %379 }
 0x2f2   :  { %v382_v17 = vadd.f32 %v380_v12, %v375_v14  ;;  %v514_v14 = vstv %s643_s15 }
 0x2fa   :  { %v430_v22 = vpop.permute.xlu2 %429 }
 0x2fb   :  { %v432_v26 = vadd.f32 %v430_v22, %v425_v23  ;;  %v528_v22 = vshrl.u32 %v527_v21, 7  ;;  %v530_v23 = vand.u32 127, %v527_v21 }
 0x2fd   :  { %vm531_vm2 = vcmp.eq.s32.totalorder %v528_v22, %v530_v23 }
 0x301   :  { %v391_v16 = vpop.permute.xlu0 %390 }
 0x302   :  { %v393_v18 = vadd.f32 %v391_v16, %v386_v15  ;;  %v458_v47 = vpop.permute.xlu2 %457 }
 0x303   :  { %v460_v58 = vadd.f32 %v458_v47, %v453_v50 }
 0x304   :  { %v394_v19 = vadd.f32 %v393_v18, %v382_v17  ;;  %v525_v18 = vstv %s645_s16 }
 0x309   :  { %v419_v25 = vpop.permute.xlu1 %418 }
 0x30a   :  { %v421_v27 = vadd.f32 %v419_v25, %v414_v24 }
 0x30c   :  { %v433_v28 = vadd.f32 %v432_v26, %v421_v27 }
 0x311   :  { %v403_v33 = vpop.permute.xlu0 %402  ;;  %v442_v34 = vpop.permute.xlu1 %441 }
 0x312   :  { %v405_v35 = vadd.f32 %v403_v33, %v398_v31  ;;  %v444_v36 = vadd.f32 %v442_v34, %v437_v32 }
 0x314   :  { %v406_v40 = vadd.f32 %v405_v35, %v394_v19  ;;  %v445_v41 = vadd.f32 %v444_v36, %v433_v28 }
 0x316   :  { %v409_v44 = vadd.f32 %v408_v38, %v406_v40  ;;  %v448_v45 = vadd.f32 %v447_v39, %v445_v41 }
 0x318   :  { %v410_v52 = vmax.f32 %v409_v44, 0.0  ;;  %v449_v53 = vmax.f32 %v448_v45, 0.0 }
 0x319   :  { %v469_v55 = vpop.permute.xlu0 %468  ;;  %v481_v57 = vpop.permute.xlu1 %480 }
 0x31a   :  { %v471_v59 = vadd.f32 %v469_v55, %v464_v54  ;;  %v505_v60 = vmul.f32 %v504_v48, %v449_v53  ;;  %v494_v61 = vmul.f32 %v493_v49, %v410_v52  ;;  %v483_v63 = vadd.f32 %v481_v57, %v476_v56 }
 0x31b   :  { %v492_v8 = vmul.f32 %v491_v5, %v410_v52  ;;  %v503_v9 = vmul.f32 %v502_v6, %v449_v53 }
 0x31c   :  { %v472_v62 = vadd.f32 %v471_v59, %v460_v58  ;;  %507 = vrot.lane.b32.xlu0 %v505_v60, %s734_s6  ;;  %496 = vrot.lane.b32.xlu2 %v494_v61, %s734_s6 }
 0x31e   :  { %v484_v1 = vadd.f32 %v483_v63, %v472_v62 }
 0x320   :  { %v487_v2 = vadd.f32 %v486_v51, %v484_v1 }
 0x322   :  { %v488_v37 = vmax.f32 %v487_v2, 0.0 }
 0x324   :  { %v517_v4 = vmul.f32 %v516_v3, %v488_v37  ;;  %v515_v15 = vmul.f32 %v514_v14, %v488_v37 }
 0x326   :  { %519 = vrot.lane.b32.xlu1 %v517_v4, %s734_s6  ;;  %s737_s6 = smov [#allocation8]  }
 0x327   :  { %s553_s17 = sshll.u32 %s737_s6, 4  ;;  %s554_s17 = int_to_ptr.vmem [resolvable:$true] %s553_s17 }
 0x376   :  { %v497_v7 = vpop.permute.xlu2 %496 }
 0x377   :  { %v499_v11 = vadd.f32 %v497_v7, %v492_v8 }
 0x38e   :  { %v508_v10 = vpop.permute.xlu0 %507 }
 0x38f   :  { %v510_v12 = vadd.f32 %v508_v10, %v503_v9 }
 0x391   :  { %v511_v13 = vadd.f32 %v510_v12, %v499_v11 }
 0x398   :  { %v520_v16 = vpop.permute.xlu1 %519 }
 0x399   :  { %v522_v17 = vadd.f32 %v520_v16, %v515_v15 }
 0x39b   :  { %v523_v19 = vadd.f32 %v522_v17, %v511_v13 }
 0x39d   :  { %v526_v20 = vadd.f32 %v525_v18, %v523_v19 }
 0x39f   :  { %534 = vperm.xlu2 %658, %v526_v20  }
 0x3f9   :  { %v535_v24 = vpop.permute.xlu2 %534 }
 0x3fa   :  { %v537_v25 = vsel %vm531_vm2, %v535_v24, 0.0 }
 0x3fb   :  { %v539_v26 = vsel %vm538_vm3, %v537_v25, 0.0 }
 0x3fc   :  { %v540_v27 = vrot.slane %v539_v26, 4 }
 0x3fe   :  { %v541_v28 = vadd.f32 %v540_v27, %v539_v26 }
 0x400   :  { %v542_v29 = vrot.slane %v541_v28, 2 }
 0x402   :  { %v543_v30 = vadd.f32 %v542_v29, %v541_v28 }
 0x404   :  { %v544_v31 = vrot.slane %v543_v30, 1 }
 0x406   :  { %v545_v32 = vadd.f32 %v544_v31, %v543_v30 }
 0x408   :  { %547 = vst.msk [vmem:[#allocation8] sm:$0x1] %vm546_vm4, %v545_v32 }
 0x409   :  { %558 = dma.vmem_to_hbm [thread:$0]  %s554_s17, 16, %s556_s0, [#allocation5]  }
 0x40a   :  { %724 = dma.done.wait [#allocation5], 16  }
 0x40b   :  { %725 = vsyncadd [#allocation5], 4294967280 }
 0x40c   :  { %563 = vsyncpa [#allocation4], 1 }
 0x40d   :  { %564 = vsyncpa [#allocation5], 1 }
 0x40e   :  { %565 = vsyncpa [#allocation6], 1 }

</bundles_post_ra>
